<compile_context>
chip_gen: v6e
topology: v6e:2x2x1
jax: 0.10.0
libtpu: 0.0.40
codegen_flags: <defaults>
</compile_context>

<pallas_src>
import jax
import jax.numpy as jnp
from jax import lax
from jax.experimental import pallas as pl
from jax.experimental.pallas import tpu as pltpu

# ~16 MiB per chunk: long contiguous DMA descriptors amortize issue overhead
# while keeping two transfers in flight so multiple DMA queues stay busy.
# (No VMEM is consumed by this path, so the size is not generation-limited.)
_TARGET_CHUNK_BYTES = 16 * 1024 * 1024


def identity(x, y=None):
    """Pallas translation of Identity.forward(x, y=None) -> x.

    A pass-through is best implemented with no kernel at all (the copy of a
    no-op would cost 2N bytes of HBM traffic plus launch overhead).
    """
    del y
    return x


def _make_memcpy_kernel(n_chunks, chunk_rows, rem_rows):
    """Build an HBM->HBM memcpy kernel over the leading axis.

    n_chunks / chunk_rows / rem_rows are trace-time Python ints, so every DMA
    has a static size; offsets may be dynamic (loop induction variable).
    Semaphore slots 0/1 double-buffer the chunk DMAs, slot 2 is the tail.
    """

    def kernel(src_ref, dst_ref, sem):
        def chunk_copy(i, slot):
            off = i * chunk_rows
            return pltpu.make_async_copy(
                src_ref.at[pl.ds(off, chunk_rows)],
                dst_ref.at[pl.ds(off, chunk_rows)],
                sem.at[slot])

        # Prime up to two outstanding chunk DMAs.
        if n_chunks >= 1:
            chunk_copy(0, 0).start()
        if n_chunks >= 2:
            chunk_copy(1, 1).start()

        # Steady state: reuse a semaphore slot only after its DMA completed.
        if n_chunks >= 3:
            @pl.loop(2, n_chunks)
            def _(i):
                slot = lax.rem(i, 2)
                chunk_copy(i - 2, slot).wait()
                chunk_copy(i, slot).start()

        # Static leading-dim remainder (replaces the old wrapper-side
        # pad/concat and output slice -> no extra HBM passes, no masked vst).
        if rem_rows > 0:
            off = n_chunks * chunk_rows
            tail = pltpu.make_async_copy(
                src_ref.at[pl.ds(off, rem_rows)],
                dst_ref.at[pl.ds(off, rem_rows)],
                sem.at[2])
            tail.start()
            tail.wait()

        # Drain the last (up to) two outstanding chunk DMAs.
        if n_chunks >= 2:
            chunk_copy(n_chunks - 2, (n_chunks - 2) % 2).wait()
        if n_chunks >= 1:
            chunk_copy(n_chunks - 1, (n_chunks - 1) % 2).wait()

    return kernel


def identity_copy(x, y=None, *, chunk_bytes=_TARGET_CHUNK_BYTES):
    """Materialized identity: Pallas HBM->HBM DMA copy into a fresh buffer.

    Only needed when a distinct output buffer is genuinely required; the
    `identity` wrapper above is the zero-cost path.
    """
    del y
    if x.size == 0:
        return x

    squeeze_back = False
    if x.ndim == 0:
        x = x.reshape(1)          # trivial for a scalar; restored below
        squeeze_back = True

    itemsize = jnp.dtype(x.dtype).itemsize
    dim0 = x.shape[0]
    row_bytes = (x.size // dim0) * itemsize   # bytes per leading-index slice
    # TODO(synk): sub-byte dtypes (e.g. int4) would need packing-aware sizing.

    chunk_rows = max(1, chunk_bytes // max(1, row_bytes))
    chunk_rows = min(chunk_rows, dim0)
    n_chunks = dim0 // chunk_rows
    rem_rows = dim0 - n_chunks * chunk_rows

    out = pl.pallas_call(
        _make_memcpy_kernel(n_chunks, chunk_rows, rem_rows),
        out_shape=jax.ShapeDtypeStruct(x.shape, x.dtype),
        in_specs=[pl.BlockSpec(memory_space=pl.ANY)],   # raw HBM ref, no auto-DMA
        out_specs=pl.BlockSpec(memory_space=pl.ANY),    # DMA straight into output
        scratch_shapes=[pltpu.SemaphoreType.DMA((3,))],
        cost_estimate=pl.CostEstimate(
            flops=0, transcendentals=0,
            bytes_accessed=2 * x.size * itemsize),
    )(x)

    if squeeze_back:
        out = out.reshape(())
    return out


if __name__ == "__main__":
    key = jax.random.PRNGKey(0)
    # Small NCHW input consistent with typical conv-net usage: B=2, C=4, 16x16.
    x = jax.random.normal(key, (2, 4, 16, 16), dtype=jnp.float32)

    # Fast path: Identity.forward is a pure pass-through -> no kernel launched.
    out_fast = identity(x)
    jax.block_until_ready(out_fast)
    assert out_fast.shape == x.shape and out_fast.dtype == x.dtype
    assert bool(jnp.all(out_fast == x))

    # Explicit Pallas copy path: single whole-array HBM->HBM DMA here.
    out_copy = identity_copy(x)
    jax.block_until_ready(out_copy)
    assert out_copy.shape == x.shape and out_copy.dtype == x.dtype
    assert bool(jnp.all(out_copy == x))

    # bf16 input: no layout/sublane concerns since nothing is staged in VMEM.
    x_bf16 = x.astype(jnp.bfloat16)
    out_bf16 = identity_copy(x_bf16)
    jax.block_until_ready(out_bf16)
    assert out_bf16.shape == x_bf16.shape and out_bf16.dtype == x_bf16.dtype
    assert bool(jnp.all(out_bf16 == x_bf16))

    # Odd (non-128-divisible) shape + tiny chunk budget: exercises the
    # multi-chunk loop AND the leading-dim remainder DMA (dim0=7 -> 3 chunks
    # of 2 rows + 1 remainder row), with no wrapper-side padding anywhere.
    x_odd = jax.random.normal(jax.random.PRNGKey(1), (7, 3, 5), dtype=jnp.float32)
    out_odd = identity_copy(x_odd, chunk_bytes=2 * 3 * 5 * 4)
    jax.block_until_ready(out_odd)
    assert out_odd.shape == x_odd.shape and out_odd.dtype == x_odd.dtype
    assert bool(jnp.all(out_odd == x_odd))

    print("KERNEL_OK")
</pallas_src>

<mosaic_0001>
module attributes {stable_mosaic.version = 11 : i64} {
  func.func @kernel(%arg0: memref<2x4x16x16xf32, #tpu.memory_space<any>>, %arg1: memref<2x4x16x16xf32, #tpu.memory_space<any>>, %arg2: memref<3x!tpu.dma_semaphore, #tpu.memory_space<semaphore_mem>>) attributes {dimension_semantics = [], scalar_prefetch = 0 : i64, scratch_operands = 1 : i64, tpu.core_type = #tpu.core_type<tc>} {
    %c0_i32 = arith.constant 0 : i32
    %c0_i32_0 = arith.constant 0 : i32
    %c0_i32_1 = arith.constant 0 : i32
    %c0_i32_2 = arith.constant 0 : i32
    %c0_i32_3 = arith.constant 0 : i32
    %0 = tpu.memref_slice %arg0[%c0_i32_0, %c0_i32_1, %c0_i32_2, %c0_i32_3] : memref<2x4x16x16xf32, #tpu.memory_space<any>> -> memref<2x4x16x16xf32, #tpu.memory_space<any>>
    %c0_i32_4 = arith.constant 0 : i32
    %c0_i32_5 = arith.constant 0 : i32
    %c0_i32_6 = arith.constant 0 : i32
    %c0_i32_7 = arith.constant 0 : i32
    %1 = tpu.memref_slice %arg1[%c0_i32_4, %c0_i32_5, %c0_i32_6, %c0_i32_7] : memref<2x4x16x16xf32, #tpu.memory_space<any>> -> memref<2x4x16x16xf32, #tpu.memory_space<any>>
    %2 = tpu.memref_slice %arg2[%c0_i32] : memref<3x!tpu.dma_semaphore, #tpu.memory_space<semaphore_mem>> -> memref<1x!tpu.dma_semaphore, #tpu.memory_space<semaphore_mem>>
    %3 = tpu.memref_squeeze %2 : memref<1x!tpu.dma_semaphore, #tpu.memory_space<semaphore_mem>> -> memref<!tpu.dma_semaphore, #tpu.memory_space<semaphore_mem>>
    tpu.enqueue_dma source(%0 : memref<2x4x16x16xf32, #tpu.memory_space<any>>) target(%1 : memref<2x4x16x16xf32, #tpu.memory_space<any>>) target_semaphore(%3 : memref<!tpu.dma_semaphore, #tpu.memory_space<semaphore_mem>>)
    %c0_i32_8 = arith.constant 0 : i32
    %c0_i32_9 = arith.constant 0 : i32
    %c0_i32_10 = arith.constant 0 : i32
    %c0_i32_11 = arith.constant 0 : i32
    %c0_i32_12 = arith.constant 0 : i32
    %4 = tpu.memref_slice %arg0[%c0_i32_9, %c0_i32_10, %c0_i32_11, %c0_i32_12] : memref<2x4x16x16xf32, #tpu.memory_space<any>> -> memref<2x4x16x16xf32, #tpu.memory_space<any>>
    %c0_i32_13 = arith.constant 0 : i32
    %c0_i32_14 = arith.constant 0 : i32
    %c0_i32_15 = arith.constant 0 : i32
    %c0_i32_16 = arith.constant 0 : i32
    %5 = tpu.memref_slice %arg1[%c0_i32_13, %c0_i32_14, %c0_i32_15, %c0_i32_16] : memref<2x4x16x16xf32, #tpu.memory_space<any>> -> memref<2x4x16x16xf32, #tpu.memory_space<any>>
    %6 = tpu.memref_slice %arg2[%c0_i32_8] : memref<3x!tpu.dma_semaphore, #tpu.memory_space<semaphore_mem>> -> memref<1x!tpu.dma_semaphore, #tpu.memory_space<semaphore_mem>>
    %7 = tpu.memref_squeeze %6 : memref<1x!tpu.dma_semaphore, #tpu.memory_space<semaphore_mem>> -> memref<!tpu.dma_semaphore, #tpu.memory_space<semaphore_mem>>
    tpu.wait_dma2 semaphore(%7 : memref<!tpu.dma_semaphore, #tpu.memory_space<semaphore_mem>>) src(%4 : memref<2x4x16x16xf32, #tpu.memory_space<any>>) dst(%5 : memref<2x4x16x16xf32, #tpu.memory_space<any>>)
    return
  }
}

</mosaic_0001>

<bundles_post_ra>
// kernel: tpu_custom_call.1
= control target key start
LH: loop header
LB: loop body
LE: loop exit
PB: predicated region body
PF: predicated region fallthrough
CT: control target
= control target key end

     0   :  { %s46_s6 = smov [#allocation2]   ;;  %s47_s7 = smov 131072   ;;  %s65_s0 = inlined_call_operand.hbm [shape: f32[2,4,16,16], index: 0, kind: input, shape index: {}]   ;;  %s66_s1 = inlined_call_operand.hbm [shape: f32[2,4,16,16], index: 1, kind: output, shape index: {}]  }
   0x1   :  { %s48_s8 = smov 0  }
   0x2   :  { %12 = dma.general %s65_s0, 2048, %s66_s1, %s46_s6, %s47_s7, [#allocation4], %s48_s8, 0  }
   0x3   :  { %44 = dma.done.wait [#allocation2], 2048 }
   0x4   :  { %45 = vsyncadd [#allocation2], 4294965248 }
   0x5   :  { %18 = vsyncmov [#allocation2] }
   0x8   :  { %s19_s13 = vpop.sfrf %18 }
   0x9   :  { %p38_p0 = scmp.ne.s32.totalorder %s19_s13, 0 }
   0xb   :  { %23 = shalt.err (%p38_p0)  }
   0xc   :  { %25 = vsyncmov [#allocation2 + $0x1] }
   0xf   :  { %s26_s14 = vpop.sfrf %25 }
  0x10   :  { %p39_p1 = scmp.ne.s32.totalorder %s26_s14, 0 }
  0x12   :  { %30 = shalt.err (%p39_p1)  }
  0x13   :  { %32 = vsyncmov [#allocation2 + $0x2] }
  0x16   :  { %s33_s15 = vpop.sfrf %32 }
  0x17   :  { %p40_p2 = scmp.ne.s32.totalorder %s33_s15, 0 }
  0x19   :  { %37 = shalt.err (%p40_p2)  }

</bundles_post_ra>
